<compile_context>
chip_gen: v7x
topology: tpu7x:2x2x1
jax: 0.10.0
libtpu: 0.0.40
codegen_flags: <defaults>
</compile_context>

<pallas_src>
from functools import partial

import jax
import jax.numpy as jnp
from jax.experimental import pallas as pl
from jax.experimental.pallas import tpu as pltpu

LANE = 128                       # lane width / head output padding
HEAD_INDEX = {'what': 0, 'how': 1, 'if_can': 2}


def _round_up(n, m):
    return ((n + m - 1) // m) * m


def _pick_tm(batch):
    """Batch tile size: big tiles to amortize per-step overhead, but keep >= 2
    grid steps for mid-size batches so both TensorCores (v7x) get work."""
    if batch <= 128:
        return _round_up(max(batch, 1), 8)
    tm = 512
    while tm > 128 and pl.cdiv(batch, tm) < 2:
        tm //= 2
    return tm


# ---------------------------------------------------------------------------
# Kernel (fused MLP; head selected by the index_maps via scalar prefetch)
# ---------------------------------------------------------------------------
def _make_kernel(tm: int, sub: int):
    n_sub = tm // sub

    def kernel(head_ref,                                # scalar prefetch (SMEM)
               x_ref, w1_ref, b1_ref, w2_ref, b2_ref,
               wh_ref, bh_ref,                          # selected head (squeezed)
               o_ref):
        del head_ref  # consumed by the index_maps only
        cd = x_ref.dtype  # compute/streaming dtype (f32 or bf16)
        # Sub-block over 128-row slices so intermediates stay inside the vreg file.
        for s in range(n_sub):
            r = s * sub
            x = x_ref[pl.ds(r, sub), :]
            h1 = jnp.dot(x, w1_ref[...], preferred_element_type=jnp.float32)
            h1 = jnp.maximum(h1 + b1_ref[...], 0.0)                  # (sub, 256) f32
            h2 = jnp.dot(h1.astype(cd), w2_ref[...],
                         preferred_element_type=jnp.float32)
            h2 = jnp.maximum(h2 + b2_ref[...], 0.0)                  # (sub, 128) f32
            out = jnp.dot(h2.astype(cd), wh_ref[...],
                          preferred_element_type=jnp.float32)
            # Lane-dense (sub, 128) store — unmasked vst.
            o_ref[pl.ds(r, sub), :] = (out + bh_ref[...]).astype(o_ref.dtype)

    return kernel


# ---------------------------------------------------------------------------
# Fused jitted forward (pallas_call + logit slice in one dispatch)
# ---------------------------------------------------------------------------
@partial(jax.jit, static_argnames=("n_logits",))
def _forward_jit(head_idx, x, w1, b1, w2, b2, wh, bh, *, n_logits):
    B, K = x.shape
    H1 = w1.shape[1]                 # 256
    H2 = w2.shape[1]                 # 128
    H_pad = wh.shape[-1]             # 128 (lane-dense head output)

    TM = _pick_tm(B)
    SUB = min(TM, 128)
    x = x.astype(w1.dtype)           # stream x in the packed compute dtype

    grid = (pl.cdiv(B, TM),)         # partial last tile handled by the pipeline

    grid_spec = pltpu.PrefetchScalarGridSpec(
        num_scalar_prefetch=1,
        grid=grid,
        in_specs=[
            pl.BlockSpec((TM, K),                    lambda i, h: (i, 0)),       # x tile (real K)
            pl.BlockSpec((K, H1),                    lambda i, h: (0, 0)),       # W1 (VMEM-resident)
            pl.BlockSpec((1, H1),                    lambda i, h: (0, 0)),       # b1
            pl.BlockSpec((H1, H2),                   lambda i, h: (0, 0)),       # W2 (VMEM-resident)
            pl.BlockSpec((1, H2),                    lambda i, h: (0, 0)),       # b2
            pl.BlockSpec((pl.Squeezed(), H2, H_pad), lambda i, h: (h[0], 0, 0)), # selected head W
            pl.BlockSpec((pl.Squeezed(), 1, H_pad),  lambda i, h: (h[0], 0, 0)), # selected head b
        ],
        out_specs=pl.BlockSpec((TM, H_pad),          lambda i, h: (i, 0)),
    )

    out = pl.pallas_call(
        _make_kernel(TM, SUB),
        grid_spec=grid_spec,
        out_shape=jax.ShapeDtypeStruct((B, H_pad), jnp.float32),
        compiler_params=pltpu.CompilerParams(
            dimension_semantics=("parallel",)),
    )(head_idx, x, w1, b1, w2, b2, wh, bh)

    return out[:, :n_logits]


# Cached per-head index arrays (avoid a fresh H2D transfer every call).
_HEAD_IDX_CACHE = {}


def _head_array(head):
    arr = _HEAD_IDX_CACHE.get(head)
    if arr is None:
        arr = jnp.array([head], jnp.int32)
        _HEAD_IDX_CACHE[head] = arr
    return arr


def action_selector_forward(x, packed, question_type):
    """Forward pass matching ActionSelectorNetwork.forward.

    x: (B, input_dim)
    packed: output of pack_params()
    question_type: 'what' | 'how' | anything-else (-> if_can head)
    """
    head = HEAD_INDEX.get(question_type, 2)
    n_logits = packed['head_sizes'][head]
    return _forward_jit(_head_array(head), x,
                        packed['w1'], packed['b1'],
                        packed['w2'], packed['b2'],
                        packed['wh'], packed['bh'],
                        n_logits=n_logits)


# ---------------------------------------------------------------------------
# Parameter construction / packing
# ---------------------------------------------------------------------------
def init_params(key, input_dim, action_counts):
    """Deterministic synthetic parameters (shapes from the module __init__).

    Weights stored (in_features, out_features), biases (1, out_features).
    """
    ks = jax.random.split(key, 10)

    def lin(kw, kb, fan_in, fan_out):
        scale = 1.0 / jnp.sqrt(fan_in)
        w = jax.random.uniform(kw, (fan_in, fan_out), jnp.float32, -scale, scale)
        b = jax.random.uniform(kb, (1, fan_out), jnp.float32, -scale, scale)
        return w, b

    params = {}
    params['w1'], params['b1'] = lin(ks[0], ks[1], input_dim, 256)
    params['w2'], params['b2'] = lin(ks[2], ks[3], 256, 128)
    params['w_what'], params['b_what'] = lin(ks[4], ks[5], 128, action_counts['what'] - 1)
    params['w_how'], params['b_how'] = lin(ks[6], ks[7], 128, action_counts['how'] - 1)
    params['w_if_can'], params['b_if_can'] = lin(ks[8], ks[9], 128, action_counts['if_can'] - 1)
    return params


def pack_params(params, compute_dtype=jnp.float32):
    """One-time packing.

    * No K padding: W1 keeps its real (input_dim, 256) shape.
    * Heads zero-padded to 128 lanes and stacked: wh (3, 128, 128), bh (3, 1, 128).
    * Matmul operands (W1, W2, wh) stored in `compute_dtype` (f32 default,
      bf16 for the streaming-optimized path); biases stay f32 since they add to
      f32 MXU accumulators.
    """
    cd = compute_dtype
    head_sizes, wh_list, bh_list = [], [], []
    for wk, bk in (('w_what', 'b_what'), ('w_how', 'b_how'), ('w_if_can', 'b_if_can')):
        w, b = params[wk], params[bk]
        h = w.shape[1]
        head_sizes.append(h)
        wh_list.append(jnp.zeros((128, LANE), jnp.float32).at[:, :h].set(w))
        bh_list.append(jnp.zeros((1, LANE), jnp.float32).at[:, :h].set(b))

    return dict(
        w1=params['w1'].astype(cd),
        b1=params['b1'].astype(jnp.float32),
        w2=params['w2'].astype(cd),
        b2=params['b2'].astype(jnp.float32),
        wh=jnp.stack(wh_list).astype(cd),       # (3, 128, 128)
        bh=jnp.stack(bh_list).astype(jnp.float32),  # (3, 1, 128)
        head_sizes=tuple(head_sizes),
    )


# ---------------------------------------------------------------------------
# Pure-JAX reference (unpadded, f32)
# ---------------------------------------------------------------------------
def _reference(x, params, question_type):
    if question_type == 'what':
        wh, bh = params['w_what'], params['b_what']
    elif question_type == 'how':
        wh, bh = params['w_how'], params['b_how']
    else:
        wh, bh = params['w_if_can'], params['b_if_can']
    h = jnp.maximum(x @ params['w1'] + params['b1'], 0.0)
    h = jnp.maximum(h @ params['w2'] + params['b2'], 0.0)
    return h @ wh + bh


if __name__ == "__main__":
    key = jax.random.PRNGKey(0)
    k_x, k_p, k_x2 = jax.random.split(key, 3)

    input_dim = 32
    action_counts = {'what': 6, 'how': 5, 'if_can': 4}   # head dims: 5, 4, 3
    params = init_params(k_p, input_dim, action_counts)

    ok = True

    # Small batch, f32 streaming (matches the PyTorch module's numerics).
    x_small = jax.random.normal(k_x, (2, input_dim), jnp.float32)
    packed_f32 = pack_params(params, jnp.float32)
    for q in ('what', 'how', 'if_can'):
        out = jax.block_until_ready(action_selector_forward(x_small, packed_f32, q))
        ref = _reference(x_small, params, q)
        ok &= out.shape == ref.shape
        ok &= bool(jnp.allclose(out, ref, atol=1e-4, rtol=1e-4))

    # Larger batch: multi-step parallel grid, in-kernel 128-row sub-blocking,
    # and a partial boundary tile (300 % 256 != 0).
    x_big = jax.random.normal(k_x2, (300, input_dim), jnp.float32)
    out = jax.block_until_ready(action_selector_forward(x_big, packed_f32, 'how'))
    ref = _reference(x_big, params, 'how')
    ok &= out.shape == ref.shape
    ok &= bool(jnp.allclose(out, ref, atol=1e-4, rtol=1e-4))

    # Optional bf16 streaming path (f32 accumulation); looser tolerance.
    packed_bf16 = pack_params(params, jnp.bfloat16)
    out = jax.block_until_ready(action_selector_forward(x_small, packed_bf16, 'what'))
    ref = _reference(x_small, params, 'what')
    ok &= out.shape == ref.shape
    ok &= bool(jnp.allclose(out, ref, atol=5e-2, rtol=5e-2))

    print("KERNEL_OK" if ok else "KERNEL_MISMATCH")
</pallas_src>

<mosaic_0001>
module attributes {stable_mosaic.version = 11 : i64} {
  func.func @kernel(%arg0: i32, %arg1: memref<1xi32, #tpu.memory_space<smem>>, %arg2: memref<8x32xf32, #tpu.memory_space<vmem>>, %arg3: memref<32x256xf32, #tpu.memory_space<vmem>>, %arg4: memref<1x256xf32, #tpu.memory_space<vmem>>, %arg5: memref<256x128xf32, #tpu.memory_space<vmem>>, %arg6: memref<1x128xf32, #tpu.memory_space<vmem>>, %arg7: memref<1x128x128xf32, #tpu.memory_space<vmem>>, %arg8: memref<1x1x128xf32, #tpu.memory_space<vmem>>, %arg9: memref<8x128xf32, #tpu.memory_space<vmem>>) attributes {dimension_semantics = [#tpu.dimension_semantics<parallel>], iteration_bounds = array<i64: 1>, scalar_prefetch = 1 : i64, scratch_operands = 0 : i64, tpu.core_type = #tpu.core_type<tc>, window_params = [{transform_indices = @transform_0, window_bounds = array<i64: 8, 32>}, {pipeline_mode = #tpu.pipeline_mode<synchronous>, transform_indices = @transform_1, window_bounds = array<i64: 32, 256>}, {pipeline_mode = #tpu.pipeline_mode<synchronous>, transform_indices = @transform_2, window_bounds = array<i64: 1, 256>}, {pipeline_mode = #tpu.pipeline_mode<synchronous>, transform_indices = @transform_3, window_bounds = array<i64: 256, 128>}, {pipeline_mode = #tpu.pipeline_mode<synchronous>, transform_indices = @transform_4, window_bounds = array<i64: 1, 128>}, {transform_indices = @transform_5, window_bounds = array<i64: 1, 128, 128>}, {transform_indices = @transform_6, window_bounds = array<i64: 1, 1, 128>}, {transform_indices = @transform_7, window_bounds = array<i64: 8, 128>}]} {
    %c0 = arith.constant 0 : index
    %c0_0 = arith.constant 0 : index
    %0 = vector.load %arg2[%c0, %c0_0] : memref<8x32xf32, #tpu.memory_space<vmem>>, vector<8x32xf32>
    %c0_1 = arith.constant 0 : index
    %c0_2 = arith.constant 0 : index
    %1 = vector.load %arg3[%c0_1, %c0_2] : memref<32x256xf32, #tpu.memory_space<vmem>>, vector<32x256xf32>
    %cst = arith.constant dense<0.000000e+00> : vector<8x256xf32>
    %2 = tpu.matmul %0, %1, %cst {dimension_numbers = #tpu.dot_dimension_numbers<[1], [0], [0], [1], [0, 0, 1, 1], [], []>} : vector<8x32xf32>, vector<32x256xf32>, vector<8x256xf32> -> vector<8x256xf32>
    %c0_3 = arith.constant 0 : index
    %c0_4 = arith.constant 0 : index
    %3 = vector.load %arg4[%c0_3, %c0_4] : memref<1x256xf32, #tpu.memory_space<vmem>>, vector<1x256xf32>
    %4 = vector.broadcast %3 : vector<1x256xf32> to vector<8x256xf32>
    %5 = arith.addf %2, %4 : vector<8x256xf32>
    %cst_5 = arith.constant 0.000000e+00 : f32
    %6 = vector.broadcast %cst_5 : f32 to vector<8x256xf32>
    %7 = arith.maximumf %5, %6 : vector<8x256xf32>
    %c0_6 = arith.constant 0 : index
    %c0_7 = arith.constant 0 : index
    %8 = vector.load %arg5[%c0_6, %c0_7] : memref<256x128xf32, #tpu.memory_space<vmem>>, vector<256x128xf32>
    %cst_8 = arith.constant dense<0.000000e+00> : vector<8x128xf32>
    %9 = tpu.matmul %7, %8, %cst_8 {dimension_numbers = #tpu.dot_dimension_numbers<[1], [0], [0], [1], [0, 0, 1, 1], [], []>} : vector<8x256xf32>, vector<256x128xf32>, vector<8x128xf32> -> vector<8x128xf32>
    %c0_9 = arith.constant 0 : index
    %c0_10 = arith.constant 0 : index
    %10 = vector.load %arg6[%c0_9, %c0_10] : memref<1x128xf32, #tpu.memory_space<vmem>>, vector<1x128xf32>
    %11 = vector.broadcast %10 : vector<1x128xf32> to vector<8x128xf32>
    %12 = arith.addf %9, %11 : vector<8x128xf32>
    %cst_11 = arith.constant 0.000000e+00 : f32
    %13 = vector.broadcast %cst_11 : f32 to vector<8x128xf32>
    %14 = arith.maximumf %12, %13 : vector<8x128xf32>
    %c0_12 = arith.constant 0 : index
    %c0_13 = arith.constant 0 : index
    %c0_14 = arith.constant 0 : index
    %15 = vector.load %arg7[%c0_12, %c0_13, %c0_14] : memref<1x128x128xf32, #tpu.memory_space<vmem>>, vector<1x128x128xf32>
    %16 = vector.shape_cast %15 : vector<1x128x128xf32> to vector<128x128xf32>
    %cst_15 = arith.constant dense<0.000000e+00> : vector<8x128xf32>
    %17 = tpu.matmul %14, %16, %cst_15 {dimension_numbers = #tpu.dot_dimension_numbers<[1], [0], [0], [1], [0, 0, 1, 1], [], []>} : vector<8x128xf32>, vector<128x128xf32>, vector<8x128xf32> -> vector<8x128xf32>
    %c0_16 = arith.constant 0 : index
    %c0_17 = arith.constant 0 : index
    %c0_18 = arith.constant 0 : index
    %18 = vector.load %arg8[%c0_16, %c0_17, %c0_18] : memref<1x1x128xf32, #tpu.memory_space<vmem>>, vector<1x1x128xf32>
    %19 = vector.shape_cast %18 : vector<1x1x128xf32> to vector<1x128xf32>
    %20 = vector.broadcast %19 : vector<1x128xf32> to vector<8x128xf32>
    %21 = arith.addf %17, %20 : vector<8x128xf32>
    %c0_19 = arith.constant 0 : index
    %c0_20 = arith.constant 0 : index
    %22 = vector.load %arg9[%c0_19, %c0_20] : memref<8x128xf32, #tpu.memory_space<vmem>>, vector<8x128xf32>
    tpu.vector_store %arg9[%c0_19, %c0_20], %21 {strides = array<i32>} : memref<8x128xf32, #tpu.memory_space<vmem>>, vector<8x128xf32>,
    return
  }
  func.func @transform_0(%arg0: i32, %arg1: memref<1xi32, #tpu.memory_space<smem>>) -> (i32, i32) {
    %c0_i32 = arith.constant 0 : i32
    %c0_i32_0 = arith.constant 0 : i32
    return %arg0, %c0_i32 : i32, i32
  }
  func.func @transform_1(%arg0: i32, %arg1: memref<1xi32, #tpu.memory_space<smem>>) -> (i32, i32) {
    %c0_i32 = arith.constant 0 : i32
    %c0_i32_0 = arith.constant 0 : i32
    %c0_i32_1 = arith.constant 0 : i32
    return %c0_i32, %c0_i32_0 : i32, i32
  }
  func.func @transform_2(%arg0: i32, %arg1: memref<1xi32, #tpu.memory_space<smem>>) -> (i32, i32) {
    %c0_i32 = arith.constant 0 : i32
    %c0_i32_0 = arith.constant 0 : i32
    %c0_i32_1 = arith.constant 0 : i32
    return %c0_i32, %c0_i32_0 : i32, i32
  }
  func.func @transform_3(%arg0: i32, %arg1: memref<1xi32, #tpu.memory_space<smem>>) -> (i32, i32) {
    %c0_i32 = arith.constant 0 : i32
    %c0_i32_0 = arith.constant 0 : i32
    %c0_i32_1 = arith.constant 0 : i32
    return %c0_i32, %c0_i32_0 : i32, i32
  }
  func.func @transform_4(%arg0: i32, %arg1: memref<1xi32, #tpu.memory_space<smem>>) -> (i32, i32) {
    %c0_i32 = arith.constant 0 : i32
    %c0_i32_0 = arith.constant 0 : i32
    %c0_i32_1 = arith.constant 0 : i32
    return %c0_i32, %c0_i32_0 : i32, i32
  }
  func.func @transform_5(%arg0: i32, %arg1: memref<1xi32, #tpu.memory_space<smem>>) -> (i32, i32, i32) {
    %c0 = arith.constant 0 : index
    %0 = memref.load %arg1[%c0] : memref<1xi32, #tpu.memory_space<smem>>
    %c0_i32 = arith.constant 0 : i32
    %c0_i32_0 = arith.constant 0 : i32
    %c0_i32_1 = arith.constant 0 : i32
    return %0, %c0_i32, %c0_i32_0 : i32, i32, i32
  }
  func.func @transform_6(%arg0: i32, %arg1: memref<1xi32, #tpu.memory_space<smem>>) -> (i32, i32, i32) {
    %c0 = arith.constant 0 : index
    %0 = memref.load %arg1[%c0] : memref<1xi32, #tpu.memory_space<smem>>
    %c0_i32 = arith.constant 0 : i32
    %c0_i32_0 = arith.constant 0 : i32
    %c0_i32_1 = arith.constant 0 : i32
    return %0, %c0_i32, %c0_i32_0 : i32, i32, i32
  }
  func.func @transform_7(%arg0: i32, %arg1: memref<1xi32, #tpu.memory_space<smem>>) -> (i32, i32) {
    %c0_i32 = arith.constant 0 : i32
    %c0_i32_0 = arith.constant 0 : i32
    return %arg0, %c0_i32 : i32, i32
  }
}

</mosaic_0001>

<bundles_post_ra>
// kernel: _forward_jit.1
= control target key start
LH: loop header
LB: loop body
LE: loop exit
PB: predicated region body
PF: predicated region fallthrough
CT: control target
= control target key end

     0   :  { %14 = vsyncpa [#allocation5], 0  ;;  %s812_s0 = inlined_call_operand.<no memory space> [shape: s32[1], index: 0, kind: input, shape index: {}]   ;;  %s813_s1 = inlined_call_operand.vmem [shape: f32[2,32], index: 1, kind: input, shape index: {}]   ;;  %s814_s2 = inlined_call_operand.hbm [shape: f32[32,256], index: 2, kind: input, shape index: {}]   ;;  %s815_s3 = inlined_call_operand.vmem [shape: f32[1,256], index: 3, kind: input, shape index: {}]   ;;  %s816_s4 = inlined_call_operand.hbm [shape: f32[256,128], index: 4, kind: input, shape index: {}]   ;;  %s817_s5 = inlined_call_operand.vmem [shape: f32[1,128], index: 5, kind: input, shape index: {}]   ;;  %s818_s6 = inlined_call_operand.hbm [shape: f32[3,128,128], index: 6, kind: input, shape index: {}]   ;;  %s819_s7 = inlined_call_operand.vmem [shape: f32[3,1,128], index: 7, kind: input, shape index: {}]   ;;  %s820_s8 = inlined_call_operand.hbm [shape: f32[2,128], index: 8, kind: output, shape index: {}]  }
   0x1   :  { %15 = vsyncpa [#allocation8], 0 }
   0x2   :  { %16 = vsyncpa [#allocation6], 0  ;;  %s680_s27 = smov [#allocation7]   ;;  %s584_s9 = scalar_lea.hbm %s816_s4, 4096 }
   0x3   :  { %s38_s28 = sshll.u32 %s680_s27, 4  ;;  %p585_p0 = scmp.ne.s32.totalorder %s816_s4, %s584_s9  ;;  %s39_s28 = int_to_ptr.vmem [resolvable:$true] %s38_s28 }
   0x4   :  { %p588_p1 = scmp.lt.u32.totalorder %s584_s9, %s816_s4 }
   0x6   :  { %p590_p2 = pnand %p588_p1, %p585_p0 }
   0x8   :  { %593 = shalt.err (!%p590_p2)
}
   0x9   :  { %s594_s14 = scalar_lea.vmem %s39_s28, 4096  ;;  %p599_p4 = scmp.lt.s32.totalorder %s39_s28, %s39_s28 }
   0xa   :  { %p595_p3 = scmp.ne.s32.totalorder %s39_s28, %s594_s14  ;;  %p600_p5 = scmp.lt.s32.totalorder %s594_s14, %s594_s14 }
   0xc   :  { %p601_p6 = por %p600_p5, %p599_p4 }
   0xe   :  { %p602_p7 = pnand %p601_p6, %p595_p3 }
  0x10   :  { %605 = shalt.err (!%p602_p7)
}
  0x11   :  { %s681_s15 = smov 128   ;;  %s682_s16 = smov 8  }
  0x12   :  { %44 = dma.hbm_to_vmem [thread:$0]  %s816_s4, 4096, %s39_s28, [#allocation8], %s681_s15, %s681_s15, %s682_s16  }
  0x13   :  { %s683_s19 = smov [#allocation4]   ;;  %s606_s23 = scalar_lea.hbm %s814_s2, 1024 }
  0x14   :  { %s24_s20 = sshll.u32 %s683_s19, 4  ;;  %p607_p8 = scmp.ne.s32.totalorder %s814_s2, %s606_s23  ;;  %s25_s20 = int_to_ptr.vmem [resolvable:$true] %s24_s20 }
  0x15   :  { %p610_p9 = scmp.lt.u32.totalorder %s606_s23, %s814_s2 }
  0x17   :  { %p612_p10 = pnand %p610_p9, %p607_p8 }
  0x19   :  { %615 = shalt.err (!%p612_p10)
}
  0x1a   :  { %s616_s29 = scalar_lea.vmem %s25_s20, 1024  ;;  %p621_p12 = scmp.lt.s32.totalorder %s25_s20, %s25_s20 }
  0x1b   :  { %p617_p11 = scmp.ne.s32.totalorder %s25_s20, %s616_s29  ;;  %p622_p13 = scmp.lt.s32.totalorder %s616_s29, %s616_s29 }
  0x1d   :  { %p623_p0 = por %p622_p13, %p621_p12 }
  0x1f   :  { %p624_p1 = pnand %p623_p0, %p617_p11 }
  0x21   :  { %627 = shalt.err (!%p624_p1)
}
  0x22   :  { %s684_s4 = smov 256   ;;  %s685_s28 = smov 16  }
  0x23   :  { %30 = dma.hbm_to_vmem [thread:$0]  %s814_s2, 1024, %s25_s20, [#allocation5], %s684_s4, %s684_s4, %s685_s28  }
  0x24   :  { %s419_s12 = sshll.u32 %s812_s0, 11  ;;  %s686_s18 = smov [#allocation9]  }
  0x25   :  { %s55_s17 = scalar_lea.hbm %s818_s6, %s419_s12  ;;  %s56_s19 = sshll.u32 %s686_s18, 4  ;;  %s57_s19 = int_to_ptr.vmem [resolvable:$true] %s56_s19 }
  0x26   :  { %s628_s21 = scalar_lea.hbm %s55_s17, 2048  ;;  %s630_s24 = scalar_lea.hbm %s818_s6, 6144 }
  0x27   :  { %p629_p2 = scmp.ne.s32.totalorder %s55_s17, %s628_s21  ;;  %p631_p3 = scmp.lt.u32.totalorder %s55_s17, %s818_s6 }
  0x28   :  { %p632_p4 = scmp.lt.u32.totalorder %s630_s24, %s628_s21  ;;  %p634_p6 = scmp.lt.u32.totalorder %s628_s21, %s55_s17 }
  0x2a   :  { %p633_p5 = por %p632_p4, %p631_p3 }
  0x2c   :  { %p635_p7 = por %p634_p6, %p633_p5 }
  0x2e   :  { %p636_p8 = pnand %p635_p7, %p629_p2 }
  0x30   :  { %639 = shalt.err (!%p636_p8)
}
  0x31   :  { %s640_s2 = scalar_lea.vmem %s57_s19, 2048  ;;  %p645_p10 = scmp.lt.s32.totalorder %s57_s19, %s57_s19 }
  0x32   :  { %p641_p9 = scmp.ne.s32.totalorder %s57_s19, %s640_s2  ;;  %p646_p11 = scmp.lt.s32.totalorder %s640_s2, %s640_s2 }
  0x34   :  { %p647_p12 = por %p646_p11, %p645_p10 }
  0x36   :  { %p648_p13 = pnand %p647_p12, %p641_p9 }
  0x38   :  { %651 = shalt.err (!%p648_p13)
}
  0x39   :  { %62 = dma.hbm_to_vmem [thread:$0]  %s55_s17, 2048, %s57_s19, [#allocation8], %s681_s15, %s681_s15, %s682_s16  }
  0x3a   :  { %674 = dma.done.wait [#allocation5], 1024  }
  0x3b   :  { %675 = vsyncadd [#allocation5], 4294966272 }
  0x3c   :  { %676 = dma.done.wait [#allocation8], 6144  }
  0x3d   :  { %677 = vsyncadd [#allocation8], 4294961152  ;;  %v687_v0 = vmov 0.0   ;;  %v91_v1 = vld [vmem:[#allocation4 + $0x8] sm:$0xff]  ;;  %v93_v2 = vld [vmem:[#allocation4 + $0x18] sm:$0xff]  ;;  %vm110_vm0 = vcmask 261120  }
  0x3e   :  { %178 = vmatprep.mubr.f32.mxu0 %v687_v0  ;;  %v90_v3 = vld [vmem:[#allocation4] sm:$0xff]  ;;  %v507_v4 = vpack.c.bf16 %v93_v2, %v91_v1  ;;  %v92_v5 = vld [vmem:[#allocation4 + $0x10] sm:$0xff]  ;;  %v95_v6 = vld [vmem:[#allocation4 + $0x28] sm:$0xff]  ;;  %v688_v2 = vmov 0.0|0.0   ;;  %vm689_vm1 = vmmov 0   ;;  %p85_p0 = scmp.lt.s32.totalorder %s812_s0, 2 }
  0x3f   :  { %v97_v7 = vld [vmem:[#allocation4 + $0x38] sm:$0xff]  ;;  %v509_v8 = vpack.c.bf16 %v92_v5, %v90_v3  ;;  %v94_v10 = vld [vmem:[#allocation4 + $0x20] sm:$0xff]  ;;  %v96_v11 = vld [vmem:[#allocation4 + $0x30] sm:$0xff] }
  0x40   :  { %v511_v9 = vpack.c.bf16 %v97_v7, %v95_v6  ;;  %508 = vmatprep.subr.bf16.mxu0 %v507_v4  ;;  %v203_v12 = vld [vmem:[#allocation7 + $0x80] sm:$0xff]  ;;  %v204_v13 = vld [vmem:[#allocation7 + $0x88] sm:$0xff]  ;;  %v513_v15 = vpack.c.bf16 %v96_v11, %v94_v10  ;;  %v205_v18 = vld [vmem:[#allocation7 + $0x90] sm:$0xff]  ;;  %s822_s0 = smov (!%p85_p0, %s812_s0), 2 }
  0x41   :  { %v187_v14 = vld [vmem:[#allocation7] sm:$0xff]  ;;  %510 = vmatpush1.bf16.msra.mxu0 %v509_v8  ;;  %v515_v16 = vpack.c.bf16 %v204_v13, %v203_v12  ;;  %v188_v17 = vld [vmem:[#allocation7 + $0x8] sm:$0xff]  ;;  %v206_v19 = vld [vmem:[#allocation7 + $0x98] sm:$0xff]  ;;  %s87_s10 = scalar_lea.vmem %s819_s7, %s822_s0 }
  0x42   :  { %512 = vmatprep.subr.bf16.mxu0 %v511_v9  ;;  %v517_v20 = vpack.c.bf16 %v188_v17, %v187_v14  ;;  %v519_v21 = vpack.c.bf16 %v206_v19, %v205_v18  ;;  %v189_v22 = vld [vmem:[#allocation7 + $0x10] sm:$0xff]  ;;  %v190_v23 = vld [vmem:[#allocation7 + $0x18] sm:$0xff]  ;;  %v207_v24 = vld [vmem:[#allocation7 + $0xa0] sm:$0xff]  ;;  %v100_v18 = vlaneseq }
  0x43   :  { %516 = vmatprep.subr.bf16.mxu1 %v515_v16  ;;  %v208_v25 = vld [vmem:[#allocation7 + $0xa8] sm:$0xff]  ;;  %v521_v26 = vpack.c.bf16 %v190_v23, %v189_v22  ;;  %v89_v27 = vld [vmem:[%s813_s1] sm:$0xff]  ;;  %v209_v31 = vld [vmem:[#allocation7 + $0xb0] sm:$0xff] }
  0x44   :  { %518 = vmatpush3.bf16.msra.mxu1 %v517_v20  ;;  %v523_v28 = vpack.c.bf16 %v208_v25, %v207_v24  ;;  %v191_v29 = vld [vmem:[#allocation7 + $0x20] sm:$0xff]  ;;  %v192_v30 = vld [vmem:[#allocation7 + $0x28] sm:$0xff]  ;;  %v210_v32 = vld [vmem:[#allocation7 + $0xb8] sm:$0xff]  ;;  %v101_v19 = vshrl.u32 %v100_v18, 7 }
  0x45   :  { %514 = vmatpush1.bf16.msra.mxu0 %v513_v15  ;;  %520 = vmatprep.subr.bf16.mxu1 %v519_v21  ;;  %v525_v33 = vpack.c.bf16 %v192_v30, %v191_v29  ;;  %v527_v34 = vpack.c.bf16 %v210_v32, %v209_v31  ;;  %v193_v35 = vld [vmem:[#allocation7 + $0x30] sm:$0xff]  ;;  %v194_v36 = vld [vmem:[#allocation7 + $0x38] sm:$0xff]  ;;  %v211_v37 = vld [vmem:[#allocation7 + $0xc0] sm:$0xff] }
  0x46   :  { %v212_v38 = vld [vmem:[#allocation7 + $0xc8] sm:$0xff]  ;;  %v529_v39 = vpack.c.bf16 %v194_v36, %v193_v35  ;;  %v195_v41 = vld [vmem:[#allocation7 + $0x40] sm:$0xff]  ;;  %v213_v43 = vld [vmem:[#allocation7 + $0xd0] sm:$0xff]  ;;  %547 = vmatprep.subr.bf16.mxu0 %v688_v2  ;;  %v102_v20 = vsub.s32 0, %v101_v19  ;;  %v106_v22 = vsub.s32 1, %v101_v19 }
  0x47   :  { %v531_v40 = vpack.c.bf16 %v212_v38, %v211_v37  ;;  %v196_v42 = vld [vmem:[#allocation7 + $0x48] sm:$0xff]  ;;  %v214_v44 = vld [vmem:[#allocation7 + $0xd8] sm:$0xff]  ;;  %v197_v47 = vld [vmem:[#allocation7 + $0x50] sm:$0xff] }
  0x48   :  { %416 = vmatmul.mubr.msk.f32.vlgmr.msra.gmra.mrb[0].mxu0 %vm110_vm0, %v89_v27  ;;  %522 = vmatpush3.bf16.msra.mxu1 %v521_v26  ;;  %v533_v45 = vpack.c.bf16 %v196_v42, %v195_v41  ;;  %v535_v46 = vpack.c.bf16 %v214_v44, %v213_v43  ;;  %v198_v48 = vld [vmem:[#allocation7 + $0x58] sm:$0xff]  ;;  %v215_v49 = vld [vmem:[#allocation7 + $0xe0] sm:$0xff]  ;;  %v216_v50 = vld [vmem:[#allocation7 + $0xe8] sm:$0xff] }
  0x49   :  { %524 = vmatprep.subr.bf16.mxu1 %v523_v28  ;;  %v537_v51 = vpack.c.bf16 %v198_v48, %v197_v47  ;;  %v539_v52 = vpack.c.bf16 %v216_v50, %v215_v49  ;;  %v199_v53 = vld [vmem:[#allocation7 + $0x60] sm:$0xff]  ;;  %v200_v54 = vld [vmem:[#allocation7 + $0x68] sm:$0xff]  ;;  %v217_v56 = vld [vmem:[#allocation7 + $0xf0] sm:$0xff]  ;;  %504 = vmatprep.mubr.msk.f32.mxu0 %vm689_vm1, %v687_v0 }
  0x4a   :  { %v541_v55 = vpack.c.bf16 %v200_v54, %v199_v53  ;;  %v218_v57 = vld [vmem:[#allocation7 + $0xf8] sm:$0xff]  ;;  %v201_v59 = vld [vmem:[#allocation7 + $0x70] sm:$0xff]  ;;  %v297_v62 = vld [vmem:[#allocation9] sm:$0xff] }
  0x4b   :  { %v543_v58 = vpack.c.bf16 %v218_v57, %v217_v56  ;;  %v202_v60 = vld [vmem:[#allocation7 + $0x78] sm:$0xff]  ;;  %v298_v63 = vld [vmem:[#allocation9 + $0x8] sm:$0xff]  ;;  %v299_v1 = vld [vmem:[#allocation9 + $0x10] sm:$0xff] }
  0x4c   :  { %526 = vmatpush3.bf16.msra.mxu1 %v525_v33  ;;  %v545_v61 = vpack.c.bf16 %v202_v60, %v201_v59  ;;  %v548_v3 = vpack.c.bf16 %v298_v63, %v297_v62  ;;  %v300_v4 = vld [vmem:[#allocation9 + $0x18] sm:$0xff]  ;;  %v301_v6 = vld [vmem:[#allocation9 + $0x20] sm:$0xff]  ;;  %v302_v7 = vld [vmem:[#allocation9 + $0x28] sm:$0xff] }
  0x4d   :  { %528 = vmatprep.subr.bf16.mxu1 %v527_v34  ;;  %v551_v5 = vpack.c.bf16 %v300_v4, %v299_v1  ;;  %v554_v8 = vpack.c.bf16 %v302_v7, %v301_v6  ;;  %v303_v9 = vld [vmem:[#allocation9 + $0x30] sm:$0xff]  ;;  %v304_v10 = vld [vmem:[#allocation9 + $0x38] sm:$0xff]  ;;  %v305_v12 = vld [vmem:[#allocation9 + $0x40] sm:$0xff] }
  0x4e   :  { %549 = vmatpush3.bf16.msra.mxu0 %v548_v3  ;;  %v557_v11 = vpack.c.bf16 %v304_v10, %v303_v9  ;;  %v306_v13 = vld [vmem:[#allocation9 + $0x48] sm:$0xff]  ;;  %v307_v15 = vld [vmem:[#allocation9 + $0x50] sm:$0xff]  ;;  %v308_v16 = vld [vmem:[#allocation9 + $0x58] sm:$0xff] }
  0x4f   :  { %550 = vmatprep.subr.bf16.mxu0 %v688_v2  ;;  %v560_v14 = vpack.c.bf16 %v306_v13, %v305_v12  ;;  %v563_v17 = vpack.c.bf16 %v308_v16, %v307_v15  ;;  %v98_v21 = vld [vmem:[%s815_s3] sm:$0x3]  ;;  %v310_v32 = vld [vmem:[#allocation9 + $0x68] sm:$0xff]  ;;  %v311_v34 = vld [vmem:[#allocation9 + $0x70] sm:$0xff] }
  0x50   :  { %530 = vmatpush3.bf16.msra.mxu1 %v529_v39  ;;  %v103_v23 = vrot.slane %v98_v21, %v102_v20  ;;  %v107_v24 = vrot.slane %v98_v21, %v106_v22  ;;  %v309_v31 = vld [vmem:[#allocation9 + $0x60] sm:$0xff]  ;;  %v312_v35 = vld [vmem:[#allocation9 + $0x78] sm:$0xff] }
  0x51   :  { %532 = vmatprep.subr.bf16.mxu1 %v531_v40  ;;  %v566_v33 = vpack.c.bf16 %v310_v32, %v309_v31  ;;  %v569_v36 = vpack.c.bf16 %v312_v35, %v311_v34  ;;  %v417_v38 = vld [vmem:[%s817_s5] ss:$0 sm:$0xff] }
  0x52   :  { %552 = vmatpush3.bf16.msra.mxu0 %v551_v5  ;;  %v418_v0 = vld [vmem:[%s87_s10] ss:$0 sm:$0xff] }
  0x53   :  { %553 = vmatprep.subr.bf16.mxu0 %v688_v2 }
  0x54   :  { %534 = vmatpush3.bf16.msra.mxu1 %v533_v45 }
  0x55   :  { %536 = vmatprep.subr.bf16.mxu1 %v535_v46 }
  0x56   :  { %555 = vmatpush3.bf16.msra.mxu0 %v554_v8 }
  0x57   :  { %556 = vmatprep.subr.bf16.mxu0 %v688_v2 }
  0x58   :  { %538 = vmatpush3.bf16.msra.mxu1 %v537_v51 }
  0x59   :  { %540 = vmatprep.subr.bf16.mxu1 %v539_v52 }
  0x5a   :  { %558 = vmatpush3.bf16.msra.mxu0 %v557_v11 }
  0x5b   :  { %559 = vmatprep.subr.bf16.mxu0 %v688_v2 }
  0x5c   :  { %542 = vmatpush3.bf16.msra.mxu1 %v541_v55 }
  0x5d   :  { %544 = vmatprep.subr.bf16.mxu1 %v543_v58 }
  0x5e   :  { %561 = vmatpush3.bf16.msra.mxu0 %v560_v14 }
  0x5f   :  { %562 = vmatprep.subr.bf16.mxu0 %v688_v2 }
  0x60   :  { %546 = vmatpush3.bf16.msra.mxu1 %v545_v61 }
  0x62   :  { %564 = vmatpush3.bf16.msra.mxu0 %v563_v17 }
  0x63   :  { %565 = vmatprep.subr.bf16.mxu0 %v688_v2 }
  0x66   :  { %567 = vmatpush3.bf16.msra.mxu0 %v566_v33 }
  0x67   :  { %568 = vmatprep.subr.bf16.mxu0 %v688_v2 }
  0x6a   :  { %570 = vmatpush3.bf16.msra.mxu0 %v569_v36 }
 0x11b   :  { %v180_v25 = vpop.f32.mrb[0].mxu0 }
 0x11c   :  { %v181_v26 = vadd.f32 %v180_v25, %v103_v23  ;;  %v182_v27 = vpop.f32.mrb[1].mxu0 }
 0x11d   :  { %v183_v28 = vadd.f32 %v182_v27, %v107_v24 }
 0x11e   :  { %v185_v30 = vmax.f32 %v181_v26, 0.0 }
 0x11f   :  { %v186_v29 = vmax.f32 %v183_v28, 0.0 }
 0x121   :  { %290 = vmatprep.mubr.f32.mxu1 %v186_v29 }
 0x122   :  { %291 = vmatmul.mubr.f32.vlgmr.msra.gmra.mrb[0].mxu1 %v185_v30 }
 0x1f5   :  { %v452_v37 = vpop.f32.mrb[0].mxu1 }
 0x1f6   :  { %v453_v39 = vpop.f32.mrb[1].mxu1 }
 0x1f7   :  { %v454_v40 = vadd.f32 %v453_v39, %v452_v37 }
 0x1f9   :  { %v293_v41 = vadd.f32 %v454_v40, %v417_v38 }
 0x1fb   :  { %v296_v42 = vmax.f32 %v293_v41, 0.0 }
 0x1fd   :  { %505 = vmatmul.mubr.f32.vlgmr.msra.gmra.mrb[2].mxu0 %v296_v42 }
 0x2d0   :  { %v386_v43 = vpop.f32.mrb[2].mxu0 }
 0x2d1   :  { %v387_v44 = vadd.f32 %v418_v0, %v386_v43  ;;  %v506_v45 = vpop.f32.mrb[3].mxu0 }
 0x2d3   :  { %390 = vst [vmem:[#allocation10] sm:$0xff] %v387_v44 }
 0x2d4   :  { %395 = vsyncadd [#allocation6], 96  ;;  %s690_s5 = smov [#allocation10]  }
 0x2d5   :  { %s396_s11 = sshll.u32 %s690_s5, 4  ;;  %s397_s11 = int_to_ptr.vmem [resolvable:$true] %s396_s11 }
 0x2d6   :  { %s652_s12 = scalar_lea.vmem %s397_s11, 32  ;;  %s656_s13 = scalar_lea.vmem %s397_s11, 128 }
 0x2d7   :  { %p653_p1 = scmp.ne.s32.totalorder %s397_s11, %s652_s12  ;;  %p657_p2 = scmp.lt.s32.totalorder %s397_s11, %s397_s11 }
 0x2d8   :  { %p658_p3 = scmp.lt.s32.totalorder %s656_s13, %s652_s12 }
 0x2da   :  { %p659_p4 = por %p658_p3, %p657_p2 }
 0x2dc   :  { %p660_p5 = pnand %p659_p4, %p653_p1 }
 0x2de   :  { %663 = shalt.err (!%p660_p5)
}
 0x2df   :  { %s664_s0 = scalar_lea.hbm %s820_s8, 32 }
 0x2e0   :  { %p665_p6 = scmp.ne.s32.totalorder %s820_s8, %s664_s0  ;;  %p668_p7 = scmp.lt.u32.totalorder %s664_s0, %s820_s8 }
 0x2e2   :  { %p670_p8 = pnand %p668_p7, %p665_p6 }
 0x2e4   :  { %673 = shalt.err (!%p670_p8)
}
 0x2e5   :  { %s691_s22 = smov 32   ;;  %s692_s23 = smov 2  }
 0x2e6   :  { %402 = dma.vmem_to_hbm [thread:$0]  %s397_s11, 32, %s820_s8, [#allocation6], %s691_s22, %s691_s22, %s692_s23  }
 0x2e7   :  { %678 = dma.done.wait [#allocation6], 128  }
 0x2e8   :  { %679 = vsyncadd [#allocation6], 4294967168 }
 0x2e9   :  { %406 = vsyncpa [#allocation5], 1 }
 0x2ea   :  { %407 = vsyncpa [#allocation8], 1 }
 0x2eb   :  { %408 = vsyncpa [#allocation6], 1 }

</bundles_post_ra>
